<compile_context>
chip_gen: v5e
topology: v5e:2x2
jax: 0.10.0
libtpu: 0.0.40
codegen_flags: <defaults>
</compile_context>

<pallas_src>
import jax
import jax.numpy as jnp
from jax.experimental import pallas as pl
from jax.experimental.pallas import tpu as pltpu


def concat_table_kernel(x_ref, w_ref, b_ref, o1_ref, o2_ref):
    # x_ref : [C_in, tm]        pixels-on-lanes tile of one image.
    # w_ref : [2*C_out, C_in]   concatenated branch weights (resident).
    # b_ref : [2*C_out, 1]      concatenated biases (resident).
    # o1_ref/o2_ref : [C_out, tm] lane-dense per-branch output tiles.
    x = x_ref[...]
    y = jnp.dot(w_ref[...], x, preferred_element_type=jnp.float32) + b_ref[...]
    c_out = o1_ref.shape[0]
    # Split the f32 accumulator at the 8-sublane boundary BEFORE casting.
    o1_ref[...] = y[:c_out].astype(o1_ref.dtype)
    o2_ref[...] = y[c_out:].astype(o2_ref.dtype)


def _pick_pixel_tile(hw_pad, n_images, max_tm=32768):
    """Largest multiple of 128 that divides hw_pad (which is a multiple of 128),
    capped at max_tm.  Keeps >= 2 total grid steps when N == 1 (v7x 2-TC)."""
    best = 128
    t = 128
    while t <= min(hw_pad, max_tm):
        if hw_pad % t == 0:
            best = t
        t += 128
    if n_images == 1 and hw_pad // best == 1 and hw_pad >= 256:
        # Cap the tile so HW splits into >= 2 grid steps (multiple of 128
        # that still divides hw_pad).
        half = hw_pad // 2
        cand = 128
        t = 128
        while t <= half:
            if hw_pad % t == 0:
                cand = t
            t += 128
        best = cand
    return best


def concat_table_forward(x_nchw, w1, b1, w2, b2):
    """x_nchw: [N, C_in, H, W]; w*: [C_in, C_out]; b*: [C_out].

    Returns [y1, y2], each [N, C_out, H, W] -- same semantics as the PyTorch
    ConcatTable of two 1x1 convs applied to the same input."""
    N, C_in, H, W = x_nchw.shape
    C_out = w1.shape[1]
    HW = H * W
    HW_pad = ((HW + 127) // 128) * 128

    # NCHW already has channels on the slow axis, spatial contiguous ->
    # transpose-free flipped layout (channels sublanes, pixels lanes).
    x3d = x_nchw.reshape(N, C_in, HW)
    if HW_pad != HW:
        # Pad pixels to a multiple of 128 so output stores stay lane-dense.
        x3d = jnp.pad(x3d, ((0, 0), (0, 0), (0, HW_pad - HW)))

    tm = _pick_pixel_tile(HW_pad, N)

    # Fuse both branches: Wcat [2*C_out, C_in], bcat [2*C_out, 1] (tiny, once).
    wcat = jnp.concatenate([w1.T, w2.T], axis=0)
    bcat = jnp.concatenate([b1, b2], axis=0).reshape(2 * C_out, 1)

    itemsize = jnp.dtype(x_nchw.dtype).itemsize
    # Double-buffered input + both output tiles (f32 in-kernel accumulate is
    # transient; DMA'd tiles are the I/O dtype).
    per_step_bytes = 2 * (C_in + 2 * C_out) * tm * itemsize
    resident_bytes = 2 * C_out * (C_in + 1) * itemsize
    needed = per_step_bytes + resident_bytes
    vmem_limit = None
    if needed > (12 << 20):  # only override when nearing v5e's 16 MiB default
        vmem_limit = int(min(48 << 20, 2 * needed + (4 << 20)))

    grid = (N, HW_pad // tm)
    out1, out2 = pl.pallas_call(
        concat_table_kernel,
        out_shape=(
            jax.ShapeDtypeStruct((N, C_out, HW_pad), x_nchw.dtype),
            jax.ShapeDtypeStruct((N, C_out, HW_pad), x_nchw.dtype),
        ),
        grid_spec=pltpu.PrefetchScalarGridSpec(
            num_scalar_prefetch=0,
            grid=grid,
            in_specs=[
                # x tile: one image's [C_in, tm] pixel slab.
                pl.BlockSpec((pl.Squeezed(), C_in, tm), lambda n, j: (n, 0, j)),
                # concatenated weights / biases stay resident across the grid.
                pl.BlockSpec((2 * C_out, C_in), lambda n, j: (0, 0)),
                pl.BlockSpec((2 * C_out, 1), lambda n, j: (0, 0)),
            ],
            out_specs=[
                pl.BlockSpec((pl.Squeezed(), C_out, tm), lambda n, j: (n, 0, j)),
                pl.BlockSpec((pl.Squeezed(), C_out, tm), lambda n, j: (n, 0, j)),
            ],
        ),
        compiler_params=pltpu.CompilerParams(
            dimension_semantics=("parallel", "parallel"),
            vmem_limit_bytes=vmem_limit,
        ),
        cost_estimate=pl.CostEstimate(
            flops=2 * (2 * C_out) * C_in * N * HW_pad,
            transcendentals=0,
            bytes_accessed=(C_in + 2 * C_out) * N * HW_pad * itemsize,
        ),
    )(x3d, wcat, bcat)

    if HW_pad != HW:
        out1 = out1[:, :, :HW]
        out2 = out2[:, :, :HW]
    y1 = out1.reshape(N, C_out, H, W)
    y2 = out2.reshape(N, C_out, H, W)
    return [y1, y2]


if __name__ == "__main__":
    # Small deterministic setup: x = [2, 4, 16, 16] (NCHW), two 1x1 convs 4->8.
    N, C_in, H, W, C_out = 2, 4, 16, 16, 8
    key = jax.random.PRNGKey(0)
    kx, k1, k2, kb1, kb2 = jax.random.split(key, 5)

    x = jax.random.normal(kx, (N, C_in, H, W), dtype=jnp.float32)
    # kaiming-normal-ish deterministic init (fan_in = C_in for a 1x1 conv)
    std = (2.0 / C_in) ** 0.5
    w1 = std * jax.random.normal(k1, (C_in, C_out), dtype=jnp.float32)
    w2 = std * jax.random.normal(k2, (C_in, C_out), dtype=jnp.float32)
    b1 = 0.1 * jax.random.normal(kb1, (C_out,), dtype=jnp.float32)
    b2 = 0.1 * jax.random.normal(kb2, (C_out,), dtype=jnp.float32)

    y1, y2 = concat_table_forward(x, w1, b1, w2, b2)
    jax.block_until_ready(y1)
    jax.block_until_ready(y2)

    # Reference check in plain JAX: 1x1 conv == channel matmul per pixel.
    ref1 = jnp.einsum("nchw,cd->ndhw", x, w1) + b1[None, :, None, None]
    ref2 = jnp.einsum("nchw,cd->ndhw", x, w2) + b2[None, :, None, None]
    assert y1.shape == (N, C_out, H, W) and y2.shape == (N, C_out, H, W)
    assert jnp.allclose(y1, ref1, atol=1e-5) and jnp.allclose(y2, ref2, atol=1e-5)

    print("KERNEL_OK")
</pallas_src>

<mosaic_0001>
module attributes {stable_mosaic.version = 11 : i64} {
  func.func @concat_table_kernel(%arg0: i32, %arg1: i32, %arg2: memref<1x4x256xf32, #tpu.memory_space<vmem>>, %arg3: memref<16x4xf32, #tpu.memory_space<vmem>>, %arg4: memref<16x1xf32, #tpu.memory_space<vmem>>, %arg5: memref<1x8x256xf32, #tpu.memory_space<vmem>>, %arg6: memref<1x8x256xf32, #tpu.memory_space<vmem>>) attributes {dimension_semantics = [#tpu.dimension_semantics<parallel>, #tpu.dimension_semantics<parallel>], iteration_bounds = array<i64: 2, 1>, scalar_prefetch = 0 : i64, scratch_operands = 0 : i64, tpu.core_type = #tpu.core_type<tc>, window_params = [{transform_indices = @transform_0, window_bounds = array<i64: 1, 4, 256>}, {pipeline_mode = #tpu.pipeline_mode<synchronous>, transform_indices = @transform_1, window_bounds = array<i64: 16, 4>}, {pipeline_mode = #tpu.pipeline_mode<synchronous>, transform_indices = @transform_2, window_bounds = array<i64: 16, 1>}, {transform_indices = @transform_3, window_bounds = array<i64: 1, 8, 256>}, {transform_indices = @transform_4, window_bounds = array<i64: 1, 8, 256>}]} {
    %c0 = arith.constant 0 : index
    %c0_0 = arith.constant 0 : index
    %c0_1 = arith.constant 0 : index
    %0 = vector.load %arg2[%c0, %c0_0, %c0_1] : memref<1x4x256xf32, #tpu.memory_space<vmem>>, vector<1x4x256xf32>
    %1 = vector.shape_cast %0 : vector<1x4x256xf32> to vector<4x256xf32>
    %c0_2 = arith.constant 0 : index
    %c0_3 = arith.constant 0 : index
    %2 = vector.load %arg3[%c0_2, %c0_3] : memref<16x4xf32, #tpu.memory_space<vmem>>, vector<16x4xf32>
    %cst = arith.constant dense<0.000000e+00> : vector<16x256xf32>
    %3 = tpu.matmul %2, %1, %cst {dimension_numbers = #tpu.dot_dimension_numbers<[1], [0], [0], [1], [0, 0, 1, 1], [], []>} : vector<16x4xf32>, vector<4x256xf32>, vector<16x256xf32> -> vector<16x256xf32>
    %c0_4 = arith.constant 0 : index
    %c0_5 = arith.constant 0 : index
    %4 = vector.load %arg4[%c0_4, %c0_5] : memref<16x1xf32, #tpu.memory_space<vmem>>, vector<16x1xf32>
    %5 = vector.broadcast %4 : vector<16x1xf32> to vector<16x256xf32>
    %6 = arith.addf %3, %5 : vector<16x256xf32>
    %7 = vector.extract_strided_slice %6 {offsets = [0, 0], sizes = [8, 256], strides = [1, 1]} : vector<16x256xf32> to vector<8x256xf32>
    %c0_6 = arith.constant 0 : index
    %c0_7 = arith.constant 0 : index
    %c0_8 = arith.constant 0 : index
    %8 = vector.load %arg5[%c0_6, %c0_7, %c0_8] : memref<1x8x256xf32, #tpu.memory_space<vmem>>, vector<1x8x256xf32>
    %9 = vector.shape_cast %8 : vector<1x8x256xf32> to vector<8x256xf32>
    %10 = vector.shape_cast %7 : vector<8x256xf32> to vector<1x8x256xf32>
    tpu.vector_store %arg5[%c0_6, %c0_7, %c0_8], %10 {strides = array<i32>} : memref<1x8x256xf32, #tpu.memory_space<vmem>>, vector<1x8x256xf32>,
    %11 = vector.extract_strided_slice %6 {offsets = [8, 0], sizes = [8, 256], strides = [1, 1]} : vector<16x256xf32> to vector<8x256xf32>
    %c0_9 = arith.constant 0 : index
    %c0_10 = arith.constant 0 : index
    %c0_11 = arith.constant 0 : index
    %12 = vector.load %arg6[%c0_9, %c0_10, %c0_11] : memref<1x8x256xf32, #tpu.memory_space<vmem>>, vector<1x8x256xf32>
    %13 = vector.shape_cast %12 : vector<1x8x256xf32> to vector<8x256xf32>
    %14 = vector.shape_cast %11 : vector<8x256xf32> to vector<1x8x256xf32>
    tpu.vector_store %arg6[%c0_9, %c0_10, %c0_11], %14 {strides = array<i32>} : memref<1x8x256xf32, #tpu.memory_space<vmem>>, vector<1x8x256xf32>,
    return
  }
  func.func @transform_0(%arg0: i32, %arg1: i32) -> (i32, i32, i32) {
    %c0_i32 = arith.constant 0 : i32
    %c0_i32_0 = arith.constant 0 : i32
    return %arg0, %c0_i32, %arg1 : i32, i32, i32
  }
  func.func @transform_1(%arg0: i32, %arg1: i32) -> (i32, i32) {
    %c0_i32 = arith.constant 0 : i32
    %c0_i32_0 = arith.constant 0 : i32
    %c0_i32_1 = arith.constant 0 : i32
    return %c0_i32, %c0_i32_0 : i32, i32
  }
  func.func @transform_2(%arg0: i32, %arg1: i32) -> (i32, i32) {
    %c0_i32 = arith.constant 0 : i32
    %c0_i32_0 = arith.constant 0 : i32
    %c0_i32_1 = arith.constant 0 : i32
    return %c0_i32, %c0_i32_0 : i32, i32
  }
  func.func @transform_3(%arg0: i32, %arg1: i32) -> (i32, i32, i32) {
    %c0_i32 = arith.constant 0 : i32
    %c0_i32_0 = arith.constant 0 : i32
    return %arg0, %c0_i32, %arg1 : i32, i32, i32
  }
  func.func @transform_4(%arg0: i32, %arg1: i32) -> (i32, i32, i32) {
    %c0_i32 = arith.constant 0 : i32
    %c0_i32_0 = arith.constant 0 : i32
    return %arg0, %c0_i32, %arg1 : i32, i32, i32
  }
}

</mosaic_0001>

<bundles_post_ra>
// kernel: tpu_custom_call.1
= control target key start
LH: loop header
LB: loop body
LE: loop exit
PB: predicated region body
PF: predicated region fallthrough
CT: control target
= control target key end

     0   :  { %10 = vsyncpa [#allocation3], 0  ;;  %s833_s0 = inlined_call_operand.vmem [shape: f32[2,4,256], index: 0, kind: input, shape index: {}]   ;;  %s834_s1 = inlined_call_operand.vmem [shape: f32[16,4], index: 1, kind: input, shape index: {}]   ;;  %s835_s2 = inlined_call_operand.vmem [shape: f32[16,1], index: 2, kind: input, shape index: {}]   ;;  %s836_s3 = inlined_call_operand.hbm [shape: f32[2,8,256], index: 3, kind: output, shape index: {0}]   ;;  %s837_s4 = inlined_call_operand.hbm [shape: f32[2,8,256], index: 4, kind: output, shape index: {1}]  }
   0x1   :  { %12 = vsyncpa [#allocation3 + $0x1], 0 }
   0x2   :  { %13 = vsyncpa [#allocation5], 0 }
   0x3   :  { %15 = vsyncpa [#allocation5 + $0x1], 0  ;;  %s703_s15 = smov 0   ;;  %s705_s16 = smov 0  }
   0x4   :  { %s707_s17 = smov 0   ;;  %s709_s18 = smov 0  }
   0x5   :  { %s711_s19 = smov 0   ;;  %s713_s20 = smov 0  }
   0x6 LB: > { %s475_s21 = sadd.s32 4294967295, %s675_s20   ;;  %s476_s22 = sadd.s32 4294967294, %s675_s20   ;;  %s675_s20 = sphi %s713_s20, %s21_s20   ;;  %s671_s19 = sphi %s711_s19, %s844_s19   ;;  %s667_s18 = sphi %s709_s18, %s843_s18   ;;  %s663_s17 = sphi %s707_s17, %s842_s17   ;;  %s659_s16 = sphi %s705_s16, %s841_s16   ;;  %s655_s15 = sphi %s703_s15, %s840_s15  }
   0x7   : > { %s33_s23 = sadd.s32 1, %s671_s19  ;;  %s112_s24 = sadd.s32 1, %s663_s17 }
   0x8   : > { %p35_p0 = scmp.ge.s32.totalorder %s33_s23, 2  ;;  %p122_p1 = scmp.ne.s32.totalorder %s663_s17, %s659_s16 }
   0x9   : > { %p123_p2 = scmp.eq.s32.totalorder %s475_s21, 1  ;;  %p128_p3 = scmp.ne.s32.totalorder %s659_s16, %s655_s15 }
   0xa   : > { %s846_s23 = smov (%p35_p0, %s33_s23), 0  ;;  %p129_p5 = scmp.eq.s32.totalorder %s476_s22, 1 }
   0xb   : > { %p743_p4 = por %p123_p2, %p122_p1  ;;  %s107_s26 = ssub.s32 %s671_s19, %s846_s23 }
   0xc   : > { %p479_p6 = scmp.ge.s32.totalorder %s675_s20, 1  ;;  %p110_p7 = scmp.eq.s32.totalorder %s107_s26, 0 }
   0xd   : > { %p750_p8 = por %p129_p5, %p128_p3  ;;  %p194_p9 = scmp.lt.s32.totalorder %s675_s20, 3 }
   0xe   : > { %s756_s28 = scalar_select %p110_p7, %s663_s17, %s112_s24  }
   0xf   : > { %p195_p10 = pnand %p479_p6, %p194_p9 }
  0x10   : > { %p230_p11 = scmp.lt.s32.totalorder (!%p195_p10), %s667_s18, 1  ;;  %s776_s22 = sand.u32 (!%p195_p10), 1, %s659_s16  }
  0x11   : > { %198 = sbr.rel (%p195_p10) target bundleno = 181 (0xb5), region = 32  ;;  %s499_s24 = sshll.u32 (!%p195_p10), %s667_s18, 4 }
  0x12   : > { %s480_s26 = sshll.u32 (!%p195_p10), %s776_s22, 4  ;;  %s786_s11 = scalar_lea.hbm (!%p195_p10), %s837_s4, %s499_s24 }
  0x13   : > { %s362_s13 = sshll.u32 (!%p195_p10), %s786_s11, 4  ;;  %s323_s14 = scalar_lea.sflag (!%p195_p10), [#allocation3], %s776_s22  ;;  %s363_s13 = int_to_ptr.hbm [resolvable:$true] %s362_s13 }
  0x16   : > { %v677_v0 = vmov 0   ;;  %v244_v1 = vld [vmem:[%s835_s2] sm:$0xff]  ;;  %s231_s5 = scalar_select %p230_p11, %s667_s18, 1  ;;  %v245_v3 = vld [vmem:[%s835_s2 + $0x8] sm:$0xff]  ;;  %vm267_vm0 = vcmask 1043456   ;;  %vm260_vm1 = vcmask 31744  }
  0x17   : > { %564 = vset.pattern.permute.xlu0 %v677_v0  ;;  %v242_v4 = vld [vmem:[%s834_s1] sm:$0xff]  ;;  %v243_v5 = vld [vmem:[%s834_s1 + $0x8] sm:$0xff]  ;;  %s228_s18 = scalar_lea.vmem [#allocation4], %s480_s26 }
  0x18   : > { %248 = vperm.xlu0 %564, %v244_v1   ;;  %s498_s6 = sshll.u32 %s231_s5, 3  ;;  %s341_s5 = scalar_lea.hbm %s836_s3, %s499_s24 }
  0x19   : > { %s237_s9 = scalar_lea.vmem %s833_s0, %s498_s6  ;;  %s221_s6 = scalar_lea.vmem [#allocation2], %s480_s26 }
  0x1a   : > { %v241_v2 = vld [vmem:[%s237_s9] sm:$0xff]  ;;  %s343_s7 = sshll.u32 %s221_s6, 4  ;;  %s345_s8 = sshll.u32 %s341_s5, 4  ;;  %s344_s7 = int_to_ptr.vmem [resolvable:$true] %s343_s7  ;;  %s346_s8 = int_to_ptr.hbm [resolvable:$true] %s345_s8 }
  0x1b   : > { %257 = vst [vmem:[#allocation1] ss:$2 sm:$0xff] %v241_v2  ;;  %s360_s12 = sshll.u32 %s228_s18, 4  ;;  %s579_s21 = sshra.s32 %s346_s8, 4  ;;  %s580_s21 = int_to_ptr.hbm [resolvable:$true] %s579_s21  ;;  %s361_s12 = int_to_ptr.vmem [resolvable:$true] %s360_s12 }
  0x1c   : > { %s581_s29 = scalar_lea.hbm %s580_s21, 16  ;;  %s585_s5 = scalar_lea.hbm %s836_s3, 32 }
  0x1d   : > { %p582_p12 = scmp.ne.s32.totalorder %s580_s21, %s581_s29  ;;  %p586_p1 = scmp.lt.s32.totalorder %s580_s21, %s836_s3 }
  0x1e   : > { %p587_p2 = scmp.lt.s32.totalorder %s585_s5, %s581_s29 }
  0x1f   : > { %p583_p13 = pnand %p582_p12, %p743_p4 }
  0x20   : > { %253 = vperm.xlu0 %564, %v245_v3   ;;  %p588_p3 = por %p587_p2, %p586_p1 }
  0x21   : > { %p584_p0 = pneg %p583_p13 }
  0x22   : > { %v258_v6 = vld.sshfl [vmem:[#allocation1] sm:$0xff pattern:$0x75316420]  ;;  %v259_v7 = vld.sshfl [vmem:[#allocation1 + $0x8] sm:$0xff pattern:$0x75316420] }
  0x23   : > { %484 = vmatpush.msk.msra.mxu0 %vm267_vm0, %v258_v6  ;;  %501 = vmatpush.msk.msra.mxu2 %vm267_vm0, %v258_v6  ;;  %p589_p5 = pnand %p588_p3, %p584_p0 }
  0x24   : > { %487 = vmatpush.msk.msra.mxu1 %vm267_vm0, %v259_v7  ;;  %502 = vmatpush.msk.msra.mxu3 %vm267_vm0, %v259_v7 }
  0x25   : > { %485 = vmatmul.msk.f32.vlgmr.msra.gmra.mxu0 %vm260_vm1, %v242_v4  ;;  %486 = vmatmul.msk.f32.vlgmr.msra.gmra.mxu2 %vm260_vm1, %v243_v5 }
  0x26   : > { %488 = vmatmul.msk.f32.vlgmr.msra.gmra.mxu1 %vm260_vm1, %v242_v4  ;;  %489 = vmatmul.msk.f32.vlgmr.msra.gmra.mxu3 %vm260_vm1, %v243_v5 }
  0x8a   : > { %v249_v8 = vpop.permute.xlu0 %248 }
  0xa2   : > { %v289_v9 = vpop.f32.mrf.mxu0 }
  0xa3   : > { %v290_v10 = vadd.f32 %v289_v9, %v249_v8  ;;  %v312_v11 = vpop.f32.mrf.mxu1 }
  0xa4   : > { %v313_v12 = vadd.f32 %v312_v11, %v249_v8 }
  0xa5   : > { %318 = vst [vmem:[%s221_s6] sm:$0xff] %v290_v10 }
  0xa6   : > { %319 = vst [vmem:[%s221_s6 + $0x8] sm:$0xff] %v313_v12 }
  0xa7   : > { %592 = shalt.err (!%p589_p5)
}
  0xa8   : > { %503 = dma.vmem_to_hbm [thread:$0]  (%p743_p4), %s344_s7, 256, %s346_s8, %s323_s14   ;;  %v254_v13 = vpop.permute.xlu0 %253  ;;  %v292_v14 = vpop.f32.mrf.mxu2 }
  0xa9   : > { %v293_v15 = vadd.f32 %v292_v14, %v254_v13  ;;  %v315_v16 = vpop.f32.mrf.mxu3  ;;  %s328_s26 = scalar_lea.sflag [#allocation5], %s776_s22  ;;  %s607_s6 = sshra.s32 %s363_s13, 4  ;;  %s608_s6 = int_to_ptr.hbm [resolvable:$true] %s607_s6 }
  0xaa   : > { %v316_v17 = vadd.f32 %v315_v16, %v254_v13  ;;  %s609_s11 = scalar_lea.hbm %s608_s6, 16  ;;  %s613_s7 = scalar_lea.hbm %s837_s4, 32 }
  0xab   : > { %320 = vst [vmem:[%s228_s18] sm:$0xff] %v293_v15  ;;  %p610_p6 = scmp.ne.s32.totalorder %s608_s6, %s609_s11  ;;  %p614_p10 = scmp.lt.s32.totalorder %s608_s6, %s837_s4 }
  0xac   : > { %321 = vst [vmem:[%s228_s18 + $0x8] sm:$0xff] %v316_v17  ;;  %p615_p11 = scmp.lt.s32.totalorder %s613_s7, %s609_s11 }
  0xad   : > { %p611_p7 = pnand %p610_p6, %p743_p4 }
  0xae   : > { %p616_p12 = por %p615_p11, %p614_p10 }
  0xaf   : > { %p612_p9 = pneg %p611_p7 }
  0xb1   : > { %p617_p13 = pnand %p616_p12, %p612_p9 }
  0xb3   : > { %620 = shalt.err (!%p617_p13)
}
  0xb4   : > { %504 = dma.vmem_to_hbm [thread:$0]  (%p743_p4), %s361_s12, 256, %s363_s13, %s328_s26  }
  0xb5 PF: > { %p514_p0 = scmp.ge.s32.totalorder %s675_s20, 2  ;;  %s374_s22 = sand.u32 1, %s655_s15  }
  0xb6   : > { %s375_s18 = scalar_lea.sflag [#allocation3], %s374_s22 }
  0xb7   : > { %p508_p1 = pnand %p514_p0, %p750_p8 }
  0xb9   : > { %p509_p2 = pneg %p508_p1 }
  0xbb   : > { %646 = dma.done.wait (%p509_p2), %s375_s18, 256  }
  0xbc   : > { %648 = vsyncadd (%p509_p2), %s375_s18, 4294967040  ;;  %s385_s30 = scalar_lea.sflag [#allocation5], %s374_s22 }
  0xbd   : > { %650 = dma.done.wait (%p509_p2), %s385_s30, 256  }
  0xbe   : > { %652 = vsyncadd (%p509_p2), %s385_s30, 4294967040  ;;  %s21_s20 = sadd.s32 1, %s675_s20   ;;  %s840_s15 = smov %s659_s16 }
  0xbf   : > { %p18_p3 = scmp.ge.s32.totalorder %s21_s20, 4   ;;  %s841_s16 = smov %s663_s17 }
  0xc0   : > { %s842_s17 = smov %s756_s28  ;;  %s843_s18 = smov %s671_s19 }
  0xc1   : > { %s844_s19 = smov %s846_s23  ;;  %20 = sbr.rel (!%p18_p3) target bundleno = 6 (0x6), region = 84 }
  0xc6   :  { %391 = vsyncpa [#allocation3], 1 }
  0xc7   :  { %393 = vsyncpa [#allocation3 + $0x1], 1 }
  0xc8   :  { %394 = vsyncpa [#allocation5], 1 }
  0xc9   :  { %396 = vsyncpa [#allocation5 + $0x1], 1 }

</bundles_post_ra>
